<compile_context>
chip_gen: v6e
topology: v6e:2x2x1
jax: 0.10.0
libtpu: 0.0.40
codegen_flags: <defaults>
</compile_context>

<pallas_src>
import functools

import jax
import jax.numpy as jnp
from jax import lax
from jax.experimental import pallas as pl
from jax.experimental.pallas import tpu as pltpu

EPS = 1e-5          # nn.BatchNorm2d default eps
LANE = 128          # TPU lane width
TM_TARGET = 512     # target row tile (512-1024 rows ~ 85% of HBM roofline)


# ----------------------------------------------------------------------------
# Pallas kernels
# ----------------------------------------------------------------------------
def _matmul_moments_kernel(p_ref, w_ref, y_ref, sum_ref, ssq_ref):
    """Tiled conv-as-matmul; also accumulates per-channel sum / sum-of-squares.

    Row-padded patch rows are all-zero and there is no conv bias, so they
    contribute exactly 0 to both accumulators (stats stay correct).
    """
    @pl.when(pl.program_id(0) == 0)
    def _init():
        sum_ref[...] = jnp.zeros_like(sum_ref)
        ssq_ref[...] = jnp.zeros_like(ssq_ref)

    y = jnp.dot(p_ref[...], w_ref[...], preferred_element_type=jnp.float32)
    y_ref[...] = y
    sum_ref[...] += jnp.sum(y, axis=0, keepdims=True)
    ssq_ref[...] += jnp.sum(y * y, axis=0, keepdims=True)


def _bn_scale_shift(sum_v, ssq_v, g, b, count):
    # Per-channel affine form of training-mode BN: y_hat = y * scale + shift.
    # TODO(synk): for very large N*H*W a Welford-style accumulation would be
    #             numerically safer than E[y^2] - mean^2.
    inv_n = 1.0 / count
    mean = sum_v * inv_n
    var = ssq_v * inv_n - mean * mean
    scale = lax.rsqrt(var + EPS) * g
    shift = b - mean * scale
    return scale, shift


def _bn_relu_kernel(y_ref, sum_ref, ssq_ref, g_ref, b_ref, o_ref, *, count):
    # relu(bn(y))
    scale, shift = _bn_scale_shift(sum_ref[...], ssq_ref[...],
                                   g_ref[...], b_ref[...], count)
    o_ref[...] = jnp.maximum(y_ref[...] * scale + shift, 0.0)


def _bn_add_relu_kernel(y_ref, sum_ref, ssq_ref, g_ref, b_ref, sc_ref, o_ref,
                        *, count):
    # relu(bn(y) + x)   (identity shortcut)
    scale, shift = _bn_scale_shift(sum_ref[...], ssq_ref[...],
                                   g_ref[...], b_ref[...], count)
    o_ref[...] = jnp.maximum(y_ref[...] * scale + shift + sc_ref[...], 0.0)


def _bn_proj_add_relu_kernel(y_ref, sum_ref, ssq_ref, g_ref, b_ref,
                             sc_ref, w3_ref, b3_ref, o_ref, *, count):
    # relu(bn(y) + conv1x1(x))   (projection shortcut, fused into the apply pass)
    scale, shift = _bn_scale_shift(sum_ref[...], ssq_ref[...],
                                   g_ref[...], b_ref[...], count)
    sc = jnp.dot(sc_ref[...], w3_ref[...], preferred_element_type=jnp.float32)
    sc = sc + b3_ref[...]
    o_ref[...] = jnp.maximum(y_ref[...] * scale + shift + sc, 0.0)


# ----------------------------------------------------------------------------
# pallas_call helpers
# ----------------------------------------------------------------------------
def _round_up(n, m):
    return -(-n // m) * m


def _pick_tm(rows, target=TM_TARGET):
    # Biggest sensible row tile; multiple of 16 (bf16 sublane packing).
    if rows >= target:
        return target
    return _round_up(rows, 16)


def _pad_cols(a, target):
    pad = target - a.shape[-1]
    if pad == 0:
        return a
    return jnp.pad(a, ((0, 0), (0, pad)))


def _conv_moments(patches, w_pad, tm, compute_dtype):
    """Pass 1: tiled matmul + per-channel moment accumulation."""
    rows, k = patches.shape
    cp = w_pad.shape[1]
    rows_pad = pl.cdiv(rows, tm) * tm
    p = jnp.pad(patches, ((0, rows_pad - rows), (0, 0))).astype(compute_dtype)
    wq = w_pad.astype(compute_dtype)

    y, s, ss = pl.pallas_call(
        _matmul_moments_kernel,
        out_shape=(jax.ShapeDtypeStruct((rows_pad, cp), jnp.float32),
                   jax.ShapeDtypeStruct((1, cp), jnp.float32),
                   jax.ShapeDtypeStruct((1, cp), jnp.float32)),
        grid=(rows_pad // tm,),
        in_specs=[pl.BlockSpec((tm, k), lambda i: (i, 0)),
                  pl.BlockSpec((k, cp), lambda i: (0, 0))],
        out_specs=(pl.BlockSpec((tm, cp), lambda i: (i, 0)),
                   pl.BlockSpec((1, cp), lambda i: (0, 0)),    # resident accumulator
                   pl.BlockSpec((1, cp), lambda i: (0, 0))),   # resident accumulator
        compiler_params=pltpu.CompilerParams(
            dimension_semantics=("arbitrary",)),               # stats carry across rows
    )(p, wq)
    return y, s, ss, rows_pad


def _bn_apply(kernel, count, tm, args, tiled_flags, rows_pad, cp):
    """Pass 2: tiled BN-apply (+ optional residual / projection / ReLU)."""
    in_specs = []
    for a, tiled in zip(args, tiled_flags):
        if tiled:
            in_specs.append(pl.BlockSpec((tm, a.shape[1]), lambda i: (i, 0)))
        else:
            in_specs.append(pl.BlockSpec(a.shape, lambda i: (0, 0)))
    return pl.pallas_call(
        functools.partial(kernel, count=count),
        out_shape=jax.ShapeDtypeStruct((rows_pad, cp), jnp.float32),
        grid=(rows_pad // tm,),
        in_specs=in_specs,
        out_specs=pl.BlockSpec((tm, cp), lambda i: (i, 0)),
        compiler_params=pltpu.CompilerParams(
            dimension_semantics=("parallel",)),                # shards across TCs on v7x
    )(*args)


# ----------------------------------------------------------------------------
# Plain-JAX glue: im2col patch extraction (reshape/slice only, no compute)
# ----------------------------------------------------------------------------
def _im2col(x_nhwc, ksize, stride, pad):
    N, H, W, C = x_nhwc.shape
    xp = jnp.pad(x_nhwc, ((0, 0), (pad, pad), (pad, pad), (0, 0)))
    Ho = (H + 2 * pad - ksize) // stride + 1
    Wo = (W + 2 * pad - ksize) // stride + 1
    pieces = []
    for dy in range(ksize):
        for dx in range(ksize):
            pieces.append(xp[:, dy:dy + stride * Ho:stride,
                             dx:dx + stride * Wo:stride, :])
    patches = jnp.concatenate(pieces, axis=-1)          # (N, Ho, Wo, k*k*C)
    return patches.reshape(N * Ho * Wo, ksize * ksize * C), (Ho, Wo)


# ----------------------------------------------------------------------------
# Residual forward (matches the PyTorch module's forward, training-mode BN)
# ----------------------------------------------------------------------------
def residual_forward(x_nchw, params, *, stride=1, use_1x1conv=False,
                     compute_dtype=jnp.bfloat16, tile_rows=TM_TARGET):
    x = jnp.transpose(x_nchw, (0, 2, 3, 1)).astype(jnp.float32)  # NCHW -> NHWC
    N, H, W, Cin = x.shape
    Cout = params["w1"].shape[-1]
    cp = _round_up(Cout, LANE)                                   # lane-dense output

    if not use_1x1conv:
        assert stride == 1 and Cin == Cout, \
            "identity shortcut requires stride == 1 and Cin == Cout"

    # ---- conv1 (3x3, pad=1, stride) : tiled matmul + moments -----------------
    p1, (Ho, Wo) = _im2col(x, 3, stride, 1)
    rows = N * Ho * Wo
    tm = _pick_tm(rows, tile_rows)
    # b1 is intentionally NOT applied: bias before training-mode BN is
    # cancelled exactly by the mean subtraction.
    w1m = _pad_cols(params["w1"].reshape(9 * Cin, Cout), cp)
    y1p, s1, ss1, rows_pad = _conv_moments(p1, w1m, tm, compute_dtype)

    # ---- bn1 apply + relu ----------------------------------------------------
    g1 = _pad_cols(params["g1"].reshape(1, Cout), cp)
    bt1 = _pad_cols(params["bt1"].reshape(1, Cout), cp)
    y1 = _bn_apply(_bn_relu_kernel, rows, tm,
                   (y1p, s1, ss1, g1, bt1),
                   (True, False, False, False, False),
                   rows_pad, cp)
    y1 = y1[:rows, :Cout].reshape(N, Ho, Wo, Cout)

    # ---- conv2 (3x3, pad=1, stride=1) : tiled matmul + moments ---------------
    p2, _ = _im2col(y1, 3, 1, 1)
    w2m = _pad_cols(params["w2"].reshape(9 * Cout, Cout), cp)   # b2 dropped (see above)
    y2p, s2, ss2, rows_pad2 = _conv_moments(p2, w2m, tm, compute_dtype)

    # ---- bn2 apply + shortcut add + relu -------------------------------------
    g2 = _pad_cols(params["g2"].reshape(1, Cout), cp)
    bt2 = _pad_cols(params["bt2"].reshape(1, Cout), cp)

    if use_1x1conv:
        sc = x[:, ::stride, ::stride, :].reshape(rows, Cin)
        sc = jnp.pad(sc, ((0, rows_pad2 - rows), (0, 0))).astype(compute_dtype)
        w3m = _pad_cols(params["w3"].reshape(Cin, Cout), cp).astype(compute_dtype)
        b3 = _pad_cols(params["b3"].reshape(1, Cout), cp)
        out = _bn_apply(_bn_proj_add_relu_kernel, rows, tm,
                        (y2p, s2, ss2, g2, bt2, sc, w3m, b3),
                        (True, False, False, False, False, True, False, False),
                        rows_pad2, cp)
    else:
        sc = _pad_cols(x.reshape(rows, Cout), cp)               # kept f32 (exact add)
        sc = jnp.pad(sc, ((0, rows_pad2 - rows), (0, 0)))
        out = _bn_apply(_bn_add_relu_kernel, rows, tm,
                        (y2p, s2, ss2, g2, bt2, sc),
                        (True, False, False, False, False, True),
                        rows_pad2, cp)

    out = out[:rows, :Cout].reshape(N, Ho, Wo, Cout)
    return jnp.transpose(out, (0, 3, 1, 2))                     # back to NCHW


# ----------------------------------------------------------------------------
# Pure-JAX reference (lax.conv, f32, WITH conv bias) for correctness checking
# ----------------------------------------------------------------------------
def _ref_forward(x_nchw, params, *, stride=1, use_1x1conv=False):
    x = jnp.transpose(x_nchw, (0, 2, 3, 1)).astype(jnp.float32)

    def conv(v, w, b, s, pad):
        y = lax.conv_general_dilated(
            v, w, (s, s), [(pad, pad), (pad, pad)],
            dimension_numbers=("NHWC", "HWIO", "NHWC"))
        return y + b.reshape(1, 1, 1, -1)

    def bn(y, g, bt):
        mean = jnp.mean(y, axis=(0, 1, 2), keepdims=True)
        var = jnp.mean(jnp.square(y - mean), axis=(0, 1, 2), keepdims=True)
        return (y - mean) * lax.rsqrt(var + EPS) * g.reshape(1, 1, 1, -1) \
            + bt.reshape(1, 1, 1, -1)

    y = jax.nn.relu(bn(conv(x, params["w1"], params["b1"], stride, 1),
                       params["g1"], params["bt1"]))
    y = bn(conv(y, params["w2"], params["b2"], 1, 1),
           params["g2"], params["bt2"])
    sc = conv(x, params["w3"], params["b3"], stride, 0) if use_1x1conv else x
    return jnp.transpose(jax.nn.relu(y + sc), (0, 3, 1, 2))


# ----------------------------------------------------------------------------
# Deterministic parameter init (shapes from Residual.__init__), HWIO layout
# ----------------------------------------------------------------------------
def make_params(key, in_channels, out_channels, use_1x1conv):
    ks = jax.random.split(key, 6)
    params = {
        "w1": 0.1 * jax.random.normal(ks[0], (3, 3, in_channels, out_channels),
                                      jnp.float32),
        "b1": 0.1 * jax.random.normal(ks[1], (out_channels,), jnp.float32),
        "w2": 0.1 * jax.random.normal(ks[2], (3, 3, out_channels, out_channels),
                                      jnp.float32),
        "b2": 0.1 * jax.random.normal(ks[3], (out_channels,), jnp.float32),
        # nn.BatchNorm2d default init: gamma=1, beta=0
        "g1": jnp.ones((out_channels,), jnp.float32),
        "bt1": jnp.zeros((out_channels,), jnp.float32),
        "g2": jnp.ones((out_channels,), jnp.float32),
        "bt2": jnp.zeros((out_channels,), jnp.float32),
    }
    if use_1x1conv:
        params["w3"] = 0.1 * jax.random.normal(
            ks[4], (1, 1, in_channels, out_channels), jnp.float32)
        params["b3"] = 0.1 * jax.random.normal(
            ks[5], (out_channels,), jnp.float32)
    return params


if __name__ == "__main__":
    key = jax.random.PRNGKey(0)
    kx, kp1, kp2 = jax.random.split(key, 3)

    # Input mirrors the PyTorch NCHW convention at a small size.
    x = jax.random.uniform(kx, (2, 4, 16, 16), jnp.float32)

    # Tolerance is loose because the Pallas path intentionally feeds the MXU
    # bf16 inputs (f32 accumulation) while the reference runs in f32.
    RTOL = ATOL = 5e-2

    # Case 1: use_1x1conv=True, stride=2 (projection shortcut, downsample)
    params_proj = make_params(kp1, in_channels=4, out_channels=8,
                              use_1x1conv=True)
    fwd_proj = jax.jit(functools.partial(residual_forward,
                                         stride=2, use_1x1conv=True))
    out1 = jax.block_until_ready(fwd_proj(x, params_proj))
    ref1 = _ref_forward(x, params_proj, stride=2, use_1x1conv=True)
    assert out1.shape == (2, 8, 8, 8)
    assert jnp.allclose(out1, ref1, rtol=RTOL, atol=ATOL), \
        float(jnp.max(jnp.abs(out1 - ref1)))

    # Case 2: identity shortcut (in == out channels, stride=1)
    params_id = make_params(kp2, in_channels=4, out_channels=4,
                            use_1x1conv=False)
    fwd_id = jax.jit(functools.partial(residual_forward,
                                       stride=1, use_1x1conv=False))
    out2 = jax.block_until_ready(fwd_id(x, params_id))
    ref2 = _ref_forward(x, params_id, stride=1, use_1x1conv=False)
    assert out2.shape == (2, 4, 16, 16)
    assert jnp.allclose(out2, ref2, rtol=RTOL, atol=ATOL), \
        float(jnp.max(jnp.abs(out2 - ref2)))

    print("KERNEL_OK")
</pallas_src>

<mosaic_0001>
module attributes {stable_mosaic.version = 11 : i64} {
  func.func @_matmul_moments_kernel(%arg0: i32, %arg1: memref<128x36xbf16, #tpu.memory_space<vmem>>, %arg2: memref<36x128xbf16, #tpu.memory_space<vmem>>, %arg3: memref<128x128xf32, #tpu.memory_space<vmem>>, %arg4: memref<1x128xf32, #tpu.memory_space<vmem>>, %arg5: memref<1x128xf32, #tpu.memory_space<vmem>>) attributes {dimension_semantics = [#tpu.dimension_semantics<arbitrary>], iteration_bounds = array<i64: 1>, scalar_prefetch = 0 : i64, scratch_operands = 0 : i64, tpu.core_type = #tpu.core_type<tc>, window_params = [{transform_indices = @transform_0, window_bounds = array<i64: 128, 36>}, {pipeline_mode = #tpu.pipeline_mode<synchronous>, transform_indices = @transform_1, window_bounds = array<i64: 36, 128>}, {transform_indices = @transform_2, window_bounds = array<i64: 128, 128>}, {pipeline_mode = #tpu.pipeline_mode<synchronous>, transform_indices = @transform_3, window_bounds = array<i64: 1, 128>}, {pipeline_mode = #tpu.pipeline_mode<synchronous>, transform_indices = @transform_4, window_bounds = array<i64: 1, 128>}]} {
    %c0_i32 = arith.constant 0 : i32
    %0 = arith.cmpi eq, %arg0, %c0_i32 : i32
    %1 = arith.extui %0 : i1 to i32
    %c0_i32_0 = arith.constant 0 : i32
    %2 = arith.cmpi ne, %1, %c0_i32_0 : i32
    scf.if %2 {
      %cst_16 = arith.constant 0.000000e+00 : f32
      %18 = vector.broadcast %cst_16 : f32 to vector<1x128xf32>
      %c0_17 = arith.constant 0 : index
      %c0_18 = arith.constant 0 : index
      %19 = vector.load %arg4[%c0_17, %c0_18] : memref<1x128xf32, #tpu.memory_space<vmem>>, vector<1x128xf32>
      tpu.vector_store %arg4[%c0_17, %c0_18], %18 {strides = array<i32>} : memref<1x128xf32, #tpu.memory_space<vmem>>, vector<1x128xf32>,
      %cst_19 = arith.constant 0.000000e+00 : f32
      %20 = vector.broadcast %cst_19 : f32 to vector<1x128xf32>
      %c0_20 = arith.constant 0 : index
      %c0_21 = arith.constant 0 : index
      %21 = vector.load %arg5[%c0_20, %c0_21] : memref<1x128xf32, #tpu.memory_space<vmem>>, vector<1x128xf32>
      tpu.vector_store %arg5[%c0_20, %c0_21], %20 {strides = array<i32>} : memref<1x128xf32, #tpu.memory_space<vmem>>, vector<1x128xf32>,
    } else {
    }
    %c0 = arith.constant 0 : index
    %c0_1 = arith.constant 0 : index
    %3 = vector.load %arg1[%c0, %c0_1] : memref<128x36xbf16, #tpu.memory_space<vmem>>, vector<128x36xbf16>
    %c0_2 = arith.constant 0 : index
    %c0_3 = arith.constant 0 : index
    %4 = vector.load %arg2[%c0_2, %c0_3] : memref<36x128xbf16, #tpu.memory_space<vmem>>, vector<36x128xbf16>
    %cst = arith.constant dense<0.000000e+00> : vector<128x128xf32>
    %5 = tpu.matmul %3, %4, %cst {dimension_numbers = #tpu.dot_dimension_numbers<[1], [0], [0], [1], [0, 0, 1, 1], [], []>} : vector<128x36xbf16>, vector<36x128xbf16>, vector<128x128xf32> -> vector<128x128xf32>
    %c0_4 = arith.constant 0 : index
    %c0_5 = arith.constant 0 : index
    %6 = vector.load %arg3[%c0_4, %c0_5] : memref<128x128xf32, #tpu.memory_space<vmem>>, vector<128x128xf32>
    tpu.vector_store %arg3[%c0_4, %c0_5], %5 {strides = array<i32>} : memref<128x128xf32, #tpu.memory_space<vmem>>, vector<128x128xf32>,
    %c0_6 = arith.constant 0 : index
    %c0_7 = arith.constant 0 : index
    %7 = vector.load %arg4[%c0_6, %c0_7] : memref<1x128xf32, #tpu.memory_space<vmem>>, vector<1x128xf32>
    %cst_8 = arith.constant dense<0.000000e+00> : vector<128xf32>
    %8 = vector.multi_reduction <add>, %5, %cst_8 [0] : vector<128x128xf32> to vector<128xf32>
    %9 = vector.shape_cast %8 : vector<128xf32> to vector<1x128xf32>
    %10 = arith.addf %7, %9 : vector<1x128xf32>
    %c0_9 = arith.constant 0 : index
    %c0_10 = arith.constant 0 : index
    %11 = vector.load %arg4[%c0_9, %c0_10] : memref<1x128xf32, #tpu.memory_space<vmem>>, vector<1x128xf32>
    tpu.vector_store %arg4[%c0_9, %c0_10], %10 {strides = array<i32>} : memref<1x128xf32, #tpu.memory_space<vmem>>, vector<1x128xf32>,
    %c0_11 = arith.constant 0 : index
    %c0_12 = arith.constant 0 : index
    %12 = vector.load %arg5[%c0_11, %c0_12] : memref<1x128xf32, #tpu.memory_space<vmem>>, vector<1x128xf32>
    %13 = arith.mulf %5, %5 : vector<128x128xf32>
    %cst_13 = arith.constant dense<0.000000e+00> : vector<128xf32>
    %14 = vector.multi_reduction <add>, %13, %cst_13 [0] : vector<128x128xf32> to vector<128xf32>
    %15 = vector.shape_cast %14 : vector<128xf32> to vector<1x128xf32>
    %16 = arith.addf %12, %15 : vector<1x128xf32>
    %c0_14 = arith.constant 0 : index
    %c0_15 = arith.constant 0 : index
    %17 = vector.load %arg5[%c0_14, %c0_15] : memref<1x128xf32, #tpu.memory_space<vmem>>, vector<1x128xf32>
    tpu.vector_store %arg5[%c0_14, %c0_15], %16 {strides = array<i32>} : memref<1x128xf32, #tpu.memory_space<vmem>>, vector<1x128xf32>,
    return
  }
  func.func @transform_0(%arg0: i32) -> (i32, i32) {
    %c0_i32 = arith.constant 0 : i32
    %c0_i32_0 = arith.constant 0 : i32
    return %arg0, %c0_i32 : i32, i32
  }
  func.func @transform_1(%arg0: i32) -> (i32, i32) {
    %c0_i32 = arith.constant 0 : i32
    %c0_i32_0 = arith.constant 0 : i32
    %c0_i32_1 = arith.constant 0 : i32
    return %c0_i32, %c0_i32_0 : i32, i32
  }
  func.func @transform_2(%arg0: i32) -> (i32, i32) {
    %c0_i32 = arith.constant 0 : i32
    %c0_i32_0 = arith.constant 0 : i32
    return %arg0, %c0_i32 : i32, i32
  }
  func.func @transform_3(%arg0: i32) -> (i32, i32) {
    %c0_i32 = arith.constant 0 : i32
    %c0_i32_0 = arith.constant 0 : i32
    %c0_i32_1 = arith.constant 0 : i32
    return %c0_i32, %c0_i32_0 : i32, i32
  }
  func.func @transform_4(%arg0: i32) -> (i32, i32) {
    %c0_i32 = arith.constant 0 : i32
    %c0_i32_0 = arith.constant 0 : i32
    %c0_i32_1 = arith.constant 0 : i32
    return %c0_i32, %c0_i32_0 : i32, i32
  }
}

module attributes {stable_mosaic.version = 11 : i64} {
  func.func @_bn_relu_kernel(%arg0: i32, %arg1: memref<128x128xf32, #tpu.memory_space<vmem>>, %arg2: memref<1x128xf32, #tpu.memory_space<vmem>>, %arg3: memref<1x128xf32, #tpu.memory_space<vmem>>, %arg4: memref<1x128xf32, #tpu.memory_space<vmem>>, %arg5: memref<1x128xf32, #tpu.memory_space<vmem>>, %arg6: memref<128x128xf32, #tpu.memory_space<vmem>>) attributes {dimension_semantics = [#tpu.dimension_semantics<parallel>], iteration_bounds = array<i64: 1>, scalar_prefetch = 0 : i64, scratch_operands = 0 : i64, tpu.core_type = #tpu.core_type<tc>, window_params = [{transform_indices = @transform_0, window_bounds = array<i64: 128, 128>}, {pipeline_mode = #tpu.pipeline_mode<synchronous>, transform_indices = @transform_1, window_bounds = array<i64: 1, 128>}, {pipeline_mode = #tpu.pipeline_mode<synchronous>, transform_indices = @transform_2, window_bounds = array<i64: 1, 128>}, {pipeline_mode = #tpu.pipeline_mode<synchronous>, transform_indices = @transform_3, window_bounds = array<i64: 1, 128>}, {pipeline_mode = #tpu.pipeline_mode<synchronous>, transform_indices = @transform_4, window_bounds = array<i64: 1, 128>}, {transform_indices = @transform_5, window_bounds = array<i64: 128, 128>}]} {
    %c0 = arith.constant 0 : index
    %c0_0 = arith.constant 0 : index
    %0 = vector.load %arg2[%c0, %c0_0] : memref<1x128xf32, #tpu.memory_space<vmem>>, vector<1x128xf32>
    %c0_1 = arith.constant 0 : index
    %c0_2 = arith.constant 0 : index
    %1 = vector.load %arg3[%c0_1, %c0_2] : memref<1x128xf32, #tpu.memory_space<vmem>>, vector<1x128xf32>
    %c0_3 = arith.constant 0 : index
    %c0_4 = arith.constant 0 : index
    %2 = vector.load %arg4[%c0_3, %c0_4] : memref<1x128xf32, #tpu.memory_space<vmem>>, vector<1x128xf32>
    %c0_5 = arith.constant 0 : index
    %c0_6 = arith.constant 0 : index
    %3 = vector.load %arg5[%c0_5, %c0_6] : memref<1x128xf32, #tpu.memory_space<vmem>>, vector<1x128xf32>
    %cst = arith.constant 7.812500e-03 : f32
    %4 = vector.broadcast %cst : f32 to vector<1x128xf32>
    %5 = arith.mulf %0, %4 : vector<1x128xf32>
    %cst_7 = arith.constant 7.812500e-03 : f32
    %6 = vector.broadcast %cst_7 : f32 to vector<1x128xf32>
    %7 = arith.mulf %1, %6 : vector<1x128xf32>
    %8 = arith.mulf %5, %5 : vector<1x128xf32>
    %9 = arith.subf %7, %8 : vector<1x128xf32>
    %cst_8 = arith.constant 9.99999974E-6 : f32
    %10 = vector.broadcast %cst_8 : f32 to vector<1x128xf32>
    %11 = arith.addf %9, %10 : vector<1x128xf32>
    %12 = math.rsqrt %11 : vector<1x128xf32>
    %13 = arith.mulf %12, %2 : vector<1x128xf32>
    %14 = arith.mulf %5, %13 : vector<1x128xf32>
    %15 = arith.subf %3, %14 : vector<1x128xf32>
    %c0_9 = arith.constant 0 : index
    %c0_10 = arith.constant 0 : index
    %16 = vector.load %arg1[%c0_9, %c0_10] : memref<128x128xf32, #tpu.memory_space<vmem>>, vector<128x128xf32>
    %17 = vector.broadcast %13 : vector<1x128xf32> to vector<128x128xf32>
    %18 = arith.mulf %16, %17 : vector<128x128xf32>
    %19 = vector.broadcast %15 : vector<1x128xf32> to vector<128x128xf32>
    %20 = arith.addf %18, %19 : vector<128x128xf32>
    %cst_11 = arith.constant 0.000000e+00 : f32
    %21 = vector.broadcast %cst_11 : f32 to vector<128x128xf32>
    %22 = arith.maximumf %20, %21 : vector<128x128xf32>
    %c0_12 = arith.constant 0 : index
    %c0_13 = arith.constant 0 : index
    %23 = vector.load %arg6[%c0_12, %c0_13] : memref<128x128xf32, #tpu.memory_space<vmem>>, vector<128x128xf32>
    tpu.vector_store %arg6[%c0_12, %c0_13], %22 {strides = array<i32>} : memref<128x128xf32, #tpu.memory_space<vmem>>, vector<128x128xf32>,
    return
  }
  func.func @transform_0(%arg0: i32) -> (i32, i32) {
    %c0_i32 = arith.constant 0 : i32
    %c0_i32_0 = arith.constant 0 : i32
    return %arg0, %c0_i32 : i32, i32
  }
  func.func @transform_1(%arg0: i32) -> (i32, i32) {
    %c0_i32 = arith.constant 0 : i32
    %c0_i32_0 = arith.constant 0 : i32
    %c0_i32_1 = arith.constant 0 : i32
    return %c0_i32, %c0_i32_0 : i32, i32
  }
  func.func @transform_2(%arg0: i32) -> (i32, i32) {
    %c0_i32 = arith.constant 0 : i32
    %c0_i32_0 = arith.constant 0 : i32
    %c0_i32_1 = arith.constant 0 : i32
    return %c0_i32, %c0_i32_0 : i32, i32
  }
  func.func @transform_3(%arg0: i32) -> (i32, i32) {
    %c0_i32 = arith.constant 0 : i32
    %c0_i32_0 = arith.constant 0 : i32
    %c0_i32_1 = arith.constant 0 : i32
    return %c0_i32, %c0_i32_0 : i32, i32
  }
  func.func @transform_4(%arg0: i32) -> (i32, i32) {
    %c0_i32 = arith.constant 0 : i32
    %c0_i32_0 = arith.constant 0 : i32
    %c0_i32_1 = arith.constant 0 : i32
    return %c0_i32, %c0_i32_0 : i32, i32
  }
  func.func @transform_5(%arg0: i32) -> (i32, i32) {
    %c0_i32 = arith.constant 0 : i32
    %c0_i32_0 = arith.constant 0 : i32
    return %arg0, %c0_i32 : i32, i32
  }
}

module attributes {stable_mosaic.version = 11 : i64} {
  func.func @_matmul_moments_kernel(%arg0: i32, %arg1: memref<128x72xbf16, #tpu.memory_space<vmem>>, %arg2: memref<72x128xbf16, #tpu.memory_space<vmem>>, %arg3: memref<128x128xf32, #tpu.memory_space<vmem>>, %arg4: memref<1x128xf32, #tpu.memory_space<vmem>>, %arg5: memref<1x128xf32, #tpu.memory_space<vmem>>) attributes {dimension_semantics = [#tpu.dimension_semantics<arbitrary>], iteration_bounds = array<i64: 1>, scalar_prefetch = 0 : i64, scratch_operands = 0 : i64, tpu.core_type = #tpu.core_type<tc>, window_params = [{transform_indices = @transform_0, window_bounds = array<i64: 128, 72>}, {pipeline_mode = #tpu.pipeline_mode<synchronous>, transform_indices = @transform_1, window_bounds = array<i64: 72, 128>}, {transform_indices = @transform_2, window_bounds = array<i64: 128, 128>}, {pipeline_mode = #tpu.pipeline_mode<synchronous>, transform_indices = @transform_3, window_bounds = array<i64: 1, 128>}, {pipeline_mode = #tpu.pipeline_mode<synchronous>, transform_indices = @transform_4, window_bounds = array<i64: 1, 128>}]} {
    %c0_i32 = arith.constant 0 : i32
    %0 = arith.cmpi eq, %arg0, %c0_i32 : i32
    %1 = arith.extui %0 : i1 to i32
    %c0_i32_0 = arith.constant 0 : i32
    %2 = arith.cmpi ne, %1, %c0_i32_0 : i32
    scf.if %2 {
      %cst_16 = arith.constant 0.000000e+00 : f32
      %18 = vector.broadcast %cst_16 : f32 to vector<1x128xf32>
      %c0_17 = arith.constant 0 : index
      %c0_18 = arith.constant 0 : index
      %19 = vector.load %arg4[%c0_17, %c0_18] : memref<1x128xf32, #tpu.memory_space<vmem>>, vector<1x128xf32>
      tpu.vector_store %arg4[%c0_17, %c0_18], %18 {strides = array<i32>} : memref<1x128xf32, #tpu.memory_space<vmem>>, vector<1x128xf32>,
      %cst_19 = arith.constant 0.000000e+00 : f32
      %20 = vector.broadcast %cst_19 : f32 to vector<1x128xf32>
      %c0_20 = arith.constant 0 : index
      %c0_21 = arith.constant 0 : index
      %21 = vector.load %arg5[%c0_20, %c0_21] : memref<1x128xf32, #tpu.memory_space<vmem>>, vector<1x128xf32>
      tpu.vector_store %arg5[%c0_20, %c0_21], %20 {strides = array<i32>} : memref<1x128xf32, #tpu.memory_space<vmem>>, vector<1x128xf32>,
    } else {
    }
    %c0 = arith.constant 0 : index
    %c0_1 = arith.constant 0 : index
    %3 = vector.load %arg1[%c0, %c0_1] : memref<128x72xbf16, #tpu.memory_space<vmem>>, vector<128x72xbf16>
    %c0_2 = arith.constant 0 : index
    %c0_3 = arith.constant 0 : index
    %4 = vector.load %arg2[%c0_2, %c0_3] : memref<72x128xbf16, #tpu.memory_space<vmem>>, vector<72x128xbf16>
    %cst = arith.constant dense<0.000000e+00> : vector<128x128xf32>
    %5 = tpu.matmul %3, %4, %cst {dimension_numbers = #tpu.dot_dimension_numbers<[1], [0], [0], [1], [0, 0, 1, 1], [], []>} : vector<128x72xbf16>, vector<72x128xbf16>, vector<128x128xf32> -> vector<128x128xf32>
    %c0_4 = arith.constant 0 : index
    %c0_5 = arith.constant 0 : index
    %6 = vector.load %arg3[%c0_4, %c0_5] : memref<128x128xf32, #tpu.memory_space<vmem>>, vector<128x128xf32>
    tpu.vector_store %arg3[%c0_4, %c0_5], %5 {strides = array<i32>} : memref<128x128xf32, #tpu.memory_space<vmem>>, vector<128x128xf32>,
    %c0_6 = arith.constant 0 : index
    %c0_7 = arith.constant 0 : index
    %7 = vector.load %arg4[%c0_6, %c0_7] : memref<1x128xf32, #tpu.memory_space<vmem>>, vector<1x128xf32>
    %cst_8 = arith.constant dense<0.000000e+00> : vector<128xf32>
    %8 = vector.multi_reduction <add>, %5, %cst_8 [0] : vector<128x128xf32> to vector<128xf32>
    %9 = vector.shape_cast %8 : vector<128xf32> to vector<1x128xf32>
    %10 = arith.addf %7, %9 : vector<1x128xf32>
    %c0_9 = arith.constant 0 : index
    %c0_10 = arith.constant 0 : index
    %11 = vector.load %arg4[%c0_9, %c0_10] : memref<1x128xf32, #tpu.memory_space<vmem>>, vector<1x128xf32>
    tpu.vector_store %arg4[%c0_9, %c0_10], %10 {strides = array<i32>} : memref<1x128xf32, #tpu.memory_space<vmem>>, vector<1x128xf32>,
    %c0_11 = arith.constant 0 : index
    %c0_12 = arith.constant 0 : index
    %12 = vector.load %arg5[%c0_11, %c0_12] : memref<1x128xf32, #tpu.memory_space<vmem>>, vector<1x128xf32>
    %13 = arith.mulf %5, %5 : vector<128x128xf32>
    %cst_13 = arith.constant dense<0.000000e+00> : vector<128xf32>
    %14 = vector.multi_reduction <add>, %13, %cst_13 [0] : vector<128x128xf32> to vector<128xf32>
    %15 = vector.shape_cast %14 : vector<128xf32> to vector<1x128xf32>
    %16 = arith.addf %12, %15 : vector<1x128xf32>
    %c0_14 = arith.constant 0 : index
    %c0_15 = arith.constant 0 : index
    %17 = vector.load %arg5[%c0_14, %c0_15] : memref<1x128xf32, #tpu.memory_space<vmem>>, vector<1x128xf32>
    tpu.vector_store %arg5[%c0_14, %c0_15], %16 {strides = array<i32>} : memref<1x128xf32, #tpu.memory_space<vmem>>, vector<1x128xf32>,
    return
  }
  func.func @transform_0(%arg0: i32) -> (i32, i32) {
    %c0_i32 = arith.constant 0 : i32
    %c0_i32_0 = arith.constant 0 : i32
    return %arg0, %c0_i32 : i32, i32
  }
  func.func @transform_1(%arg0: i32) -> (i32, i32) {
    %c0_i32 = arith.constant 0 : i32
    %c0_i32_0 = arith.constant 0 : i32
    %c0_i32_1 = arith.constant 0 : i32
    return %c0_i32, %c0_i32_0 : i32, i32
  }
  func.func @transform_2(%arg0: i32) -> (i32, i32) {
    %c0_i32 = arith.constant 0 : i32
    %c0_i32_0 = arith.constant 0 : i32
    return %arg0, %c0_i32 : i32, i32
  }
  func.func @transform_3(%arg0: i32) -> (i32, i32) {
    %c0_i32 = arith.constant 0 : i32
    %c0_i32_0 = arith.constant 0 : i32
    %c0_i32_1 = arith.constant 0 : i32
    return %c0_i32, %c0_i32_0 : i32, i32
  }
  func.func @transform_4(%arg0: i32) -> (i32, i32) {
    %c0_i32 = arith.constant 0 : i32
    %c0_i32_0 = arith.constant 0 : i32
    %c0_i32_1 = arith.constant 0 : i32
    return %c0_i32, %c0_i32_0 : i32, i32
  }
}

module attributes {stable_mosaic.version = 11 : i64} {
  func.func @_bn_proj_add_relu_kernel(%arg0: i32, %arg1: memref<128x128xf32, #tpu.memory_space<vmem>>, %arg2: memref<1x128xf32, #tpu.memory_space<vmem>>, %arg3: memref<1x128xf32, #tpu.memory_space<vmem>>, %arg4: memref<1x128xf32, #tpu.memory_space<vmem>>, %arg5: memref<1x128xf32, #tpu.memory_space<vmem>>, %arg6: memref<128x4xbf16, #tpu.memory_space<vmem>>, %arg7: memref<4x128xbf16, #tpu.memory_space<vmem>>, %arg8: memref<1x128xf32, #tpu.memory_space<vmem>>, %arg9: memref<128x128xf32, #tpu.memory_space<vmem>>) attributes {dimension_semantics = [#tpu.dimension_semantics<parallel>], iteration_bounds = array<i64: 1>, scalar_prefetch = 0 : i64, scratch_operands = 0 : i64, tpu.core_type = #tpu.core_type<tc>, window_params = [{transform_indices = @transform_0, window_bounds = array<i64: 128, 128>}, {pipeline_mode = #tpu.pipeline_mode<synchronous>, transform_indices = @transform_1, window_bounds = array<i64: 1, 128>}, {pipeline_mode = #tpu.pipeline_mode<synchronous>, transform_indices = @transform_2, window_bounds = array<i64: 1, 128>}, {pipeline_mode = #tpu.pipeline_mode<synchronous>, transform_indices = @transform_3, window_bounds = array<i64: 1, 128>}, {pipeline_mode = #tpu.pipeline_mode<synchronous>, transform_indices = @transform_4, window_bounds = array<i64: 1, 128>}, {transform_indices = @transform_5, window_bounds = array<i64: 128, 4>}, {pipeline_mode = #tpu.pipeline_mode<synchronous>, transform_indices = @transform_6, window_bounds = array<i64: 4, 128>}, {pipeline_mode = #tpu.pipeline_mode<synchronous>, transform_indices = @transform_7, window_bounds = array<i64: 1, 128>}, {transform_indices = @transform_8, window_bounds = array<i64: 128, 128>}]} {
    %c0 = arith.constant 0 : index
    %c0_0 = arith.constant 0 : index
    %0 = vector.load %arg2[%c0, %c0_0] : memref<1x128xf32, #tpu.memory_space<vmem>>, vector<1x128xf32>
    %c0_1 = arith.constant 0 : index
    %c0_2 = arith.constant 0 : index
    %1 = vector.load %arg3[%c0_1, %c0_2] : memref<1x128xf32, #tpu.memory_space<vmem>>, vector<1x128xf32>
    %c0_3 = arith.constant 0 : index
    %c0_4 = arith.constant 0 : index
    %2 = vector.load %arg4[%c0_3, %c0_4] : memref<1x128xf32, #tpu.memory_space<vmem>>, vector<1x128xf32>
    %c0_5 = arith.constant 0 : index
    %c0_6 = arith.constant 0 : index
    %3 = vector.load %arg5[%c0_5, %c0_6] : memref<1x128xf32, #tpu.memory_space<vmem>>, vector<1x128xf32>
    %cst = arith.constant 7.812500e-03 : f32
    %4 = vector.broadcast %cst : f32 to vector<1x128xf32>
    %5 = arith.mulf %0, %4 : vector<1x128xf32>
    %cst_7 = arith.constant 7.812500e-03 : f32
    %6 = vector.broadcast %cst_7 : f32 to vector<1x128xf32>
    %7 = arith.mulf %1, %6 : vector<1x128xf32>
    %8 = arith.mulf %5, %5 : vector<1x128xf32>
    %9 = arith.subf %7, %8 : vector<1x128xf32>
    %cst_8 = arith.constant 9.99999974E-6 : f32
    %10 = vector.broadcast %cst_8 : f32 to vector<1x128xf32>
    %11 = arith.addf %9, %10 : vector<1x128xf32>
    %12 = math.rsqrt %11 : vector<1x128xf32>
    %13 = arith.mulf %12, %2 : vector<1x128xf32>
    %14 = arith.mulf %5, %13 : vector<1x128xf32>
    %15 = arith.subf %3, %14 : vector<1x128xf32>
    %c0_9 = arith.constant 0 : index
    %c0_10 = arith.constant 0 : index
    %16 = vector.load %arg6[%c0_9, %c0_10] : memref<128x4xbf16, #tpu.memory_space<vmem>>, vector<128x4xbf16>
    %c0_11 = arith.constant 0 : index
    %c0_12 = arith.constant 0 : index
    %17 = vector.load %arg7[%c0_11, %c0_12] : memref<4x128xbf16, #tpu.memory_space<vmem>>, vector<4x128xbf16>
    %cst_13 = arith.constant dense<0.000000e+00> : vector<128x128xf32>
    %18 = tpu.matmul %16, %17, %cst_13 {dimension_numbers = #tpu.dot_dimension_numbers<[1], [0], [0], [1], [0, 0, 1, 1], [], []>} : vector<128x4xbf16>, vector<4x128xbf16>, vector<128x128xf32> -> vector<128x128xf32>
    %c0_14 = arith.constant 0 : index
    %c0_15 = arith.constant 0 : index
    %19 = vector.load %arg8[%c0_14, %c0_15] : memref<1x128xf32, #tpu.memory_space<vmem>>, vector<1x128xf32>
    %20 = vector.broadcast %19 : vector<1x128xf32> to vector<128x128xf32>
    %21 = arith.addf %18, %20 : vector<128x128xf32>
    %c0_16 = arith.constant 0 : index
    %c0_17 = arith.constant 0 : index
    %22 = vector.load %arg1[%c0_16, %c0_17] : memref<128x128xf32, #tpu.memory_space<vmem>>, vector<128x128xf32>
    %23 = vector.broadcast %13 : vector<1x128xf32> to vector<128x128xf32>
    %24 = arith.mulf %22, %23 : vector<128x128xf32>
    %25 = vector.broadcast %15 : vector<1x128xf32> to vector<128x128xf32>
    %26 = arith.addf %24, %25 : vector<128x128xf32>
    %27 = arith.addf %26, %21 : vector<128x128xf32>
    %cst_18 = arith.constant 0.000000e+00 : f32
    %28 = vector.broadcast %cst_18 : f32 to vector<128x128xf32>
    %29 = arith.maximumf %27, %28 : vector<128x128xf32>
    %c0_19 = arith.constant 0 : index
    %c0_20 = arith.constant 0 : index
    %30 = vector.load %arg9[%c0_19, %c0_20] : memref<128x128xf32, #tpu.memory_space<vmem>>, vector<128x128xf32>
    tpu.vector_store %arg9[%c0_19, %c0_20], %29 {strides = array<i32>} : memref<128x128xf32, #tpu.memory_space<vmem>>, vector<128x128xf32>,
    return
  }
  func.func @transform_0(%arg0: i32) -> (i32, i32) {
    %c0_i32 = arith.constant 0 : i32
    %c0_i32_0 = arith.constant 0 : i32
    return %arg0, %c0_i32 : i32, i32
  }
  func.func @transform_1(%arg0: i32) -> (i32, i32) {
    %c0_i32 = arith.constant 0 : i32
    %c0_i32_0 = arith.constant 0 : i32
    %c0_i32_1 = arith.constant 0 : i32
    return %c0_i32, %c0_i32_0 : i32, i32
  }
  func.func @transform_2(%arg0: i32) -> (i32, i32) {
    %c0_i32 = arith.constant 0 : i32
    %c0_i32_0 = arith.constant 0 : i32
    %c0_i32_1 = arith.constant 0 : i32
    return %c0_i32, %c0_i32_0 : i32, i32
  }
  func.func @transform_3(%arg0: i32) -> (i32, i32) {
    %c0_i32 = arith.constant 0 : i32
    %c0_i32_0 = arith.constant 0 : i32
    %c0_i32_1 = arith.constant 0 : i32
    return %c0_i32, %c0_i32_0 : i32, i32
  }
  func.func @transform_4(%arg0: i32) -> (i32, i32) {
    %c0_i32 = arith.constant 0 : i32
    %c0_i32_0 = arith.constant 0 : i32
    %c0_i32_1 = arith.constant 0 : i32
    return %c0_i32, %c0_i32_0 : i32, i32
  }
  func.func @transform_5(%arg0: i32) -> (i32, i32) {
    %c0_i32 = arith.constant 0 : i32
    %c0_i32_0 = arith.constant 0 : i32
    return %arg0, %c0_i32 : i32, i32
  }
  func.func @transform_6(%arg0: i32) -> (i32, i32) {
    %c0_i32 = arith.constant 0 : i32
    %c0_i32_0 = arith.constant 0 : i32
    %c0_i32_1 = arith.constant 0 : i32
    return %c0_i32, %c0_i32_0 : i32, i32
  }
  func.func @transform_7(%arg0: i32) -> (i32, i32) {
    %c0_i32 = arith.constant 0 : i32
    %c0_i32_0 = arith.constant 0 : i32
    %c0_i32_1 = arith.constant 0 : i32
    return %c0_i32, %c0_i32_0 : i32, i32
  }
  func.func @transform_8(%arg0: i32) -> (i32, i32) {
    %c0_i32 = arith.constant 0 : i32
    %c0_i32_0 = arith.constant 0 : i32
    return %arg0, %c0_i32 : i32, i32
  }
}

</mosaic_0001>

<bundles_post_ra>
// kernel: residual_forward.5
= control target key start
LH: loop header
LB: loop body
LE: loop exit
PB: predicated region body
PF: predicated region fallthrough
CT: control target
= control target key end

     0   :  { %v50_v7 = vlaneseq  ;;  %s269_s1 = inlined_call_operand.vmem [shape: f32[1,128], index: 1, kind: input, shape index: {}]   ;;  %s270_s2 = inlined_call_operand.vmem [shape: f32[1,128], index: 2, kind: input, shape index: {}]   ;;  %s271_s3 = inlined_call_operand.vmem [shape: f32[1,128], index: 3, kind: input, shape index: {}]   ;;  %s272_s0 = inlined_call_operand.vmem [shape: f32[128,128], index: 0, kind: input, shape index: {}]   ;;  %s273_s4 = inlined_call_operand.vmem [shape: f32[1,128], index: 4, kind: input, shape index: {}]   ;;  %s274_s5 = inlined_call_operand.vmem [shape: f32[128,128], index: 5, kind: output, shape index: {}]  }
   0x1   :  { %v20_v0 = vld [vmem:[%s269_s1] sm:$0x1]  ;;  %v34_v15 = vld [vmem:[%s272_s0 + $0x8] sm:$0xff]  ;;  %v35_v16 = vld [vmem:[%s272_s0 + $0x10] sm:$0xff] }
   0x2   :  { %v21_v1 = vld [vmem:[%s270_s2] sm:$0x1]  ;;  %v24_v2 = vmul.f32 0.0078125, %v20_v0  ;;  %v51_v8 = vshrl.u32 %v50_v7, 7  ;;  %v36_v17 = vld [vmem:[%s272_s0 + $0x18] sm:$0xff]  ;;  %v38_v21 = vld [vmem:[%s272_s0 + $0x28] sm:$0xff] }
   0x3   :  { %v25_v3 = vmul.f32 0.0078125, %v21_v1  ;;  %v22_v9 = vld [vmem:[%s271_s3] sm:$0x1]  ;;  %v39_v22 = vld [vmem:[%s272_s0 + $0x30] sm:$0xff]  ;;  %v40_v23 = vld [vmem:[%s272_s0 + $0x38] sm:$0xff] }
   0x4   :  { %v26_v4 = vmul.f32 %v24_v2, %v24_v2  ;;  %v52_v10 = vsub.s32 0, %v51_v8  ;;  %v23_v12 = vld [vmem:[%s273_s4] sm:$0x1]  ;;  %v42_v25 = vld [vmem:[%s272_s0 + $0x48] sm:$0xff]  ;;  %v43_v26 = vld [vmem:[%s272_s0 + $0x50] sm:$0xff] }
   0x5   :  { %v33_v14 = vld [vmem:[%s272_s0] sm:$0xff]  ;;  %v44_v31 = vld [vmem:[%s272_s0 + $0x58] sm:$0xff]  ;;  %v46_v33 = vld [vmem:[%s272_s0 + $0x68] sm:$0xff] }
   0x6   :  { %v27_v5 = vsub.f32 %v25_v3, %v26_v4  ;;  %v37_v18 = vld [vmem:[%s272_s0 + $0x20] sm:$0xff]  ;;  %v47_v58 = vld [vmem:[%s272_s0 + $0x70] sm:$0xff]  ;;  %v48_v59 = vld [vmem:[%s272_s0 + $0x78] sm:$0xff] }
   0x7   :  { %v41_v24 = vld [vmem:[%s272_s0 + $0x40] sm:$0xff] }
   0x8   :  { %v28_v6 = vadd.f32 1e-05, %v27_v5  ;;  %v45_v32 = vld [vmem:[%s272_s0 + $0x60] sm:$0xff] }
   0xa   :  { %129 = vrsqrt.f32 %v28_v6 }
  0x17   :  { %v130_v11 = vpop.eup %129 }
  0x18   :  { %v30_v13 = vmul.f32 %v130_v11, %v22_v9 }
  0x1a   :  { %v31_v19 = vmul.f32 %v30_v13, %v24_v2  ;;  %v53_v20 = vrot.slane %v30_v13, %v52_v10 }
  0x1c   :  { %v32_v27 = vsub.f32 %v23_v12, %v31_v19  ;;  %v55_v28 = vmul.f32 %v53_v20, %v33_v14  ;;  %v56_v29 = vmul.f32 %v53_v20, %v34_v15  ;;  %v57_v30 = vmul.f32 %v53_v20, %v35_v16 }
  0x1d   :  { %v58_v34 = vmul.f32 %v53_v20, %v36_v17  ;;  %v59_v35 = vmul.f32 %v53_v20, %v37_v18  ;;  %v60_v36 = vmul.f32 %v53_v20, %v38_v21  ;;  %v61_v37 = vmul.f32 %v53_v20, %v39_v22 }
  0x1e   :  { %v75_v38 = vrot.slane %v32_v27, %v52_v10  ;;  %v62_v39 = vmul.f32 %v53_v20, %v40_v23  ;;  %v63_v40 = vmul.f32 %v53_v20, %v41_v24  ;;  %v64_v41 = vmul.f32 %v53_v20, %v42_v25 }
  0x1f   :  { %v65_v42 = vmul.f32 %v53_v20, %v43_v26  ;;  %v66_v43 = vmul.f32 %v53_v20, %v44_v31  ;;  %v67_v44 = vmul.f32 %v53_v20, %v45_v32  ;;  %v68_v45 = vmul.f32 %v53_v20, %v46_v33 }
  0x20   :  { %v77_v46 = vadd.f32 %v75_v38, %v55_v28  ;;  %v78_v47 = vadd.f32 %v75_v38, %v56_v29  ;;  %v79_v48 = vadd.f32 %v75_v38, %v57_v30  ;;  %v80_v49 = vadd.f32 %v75_v38, %v58_v34 }
  0x21   :  { %v81_v50 = vadd.f32 %v75_v38, %v59_v35  ;;  %v82_v51 = vadd.f32 %v75_v38, %v60_v36  ;;  %v83_v52 = vadd.f32 %v75_v38, %v61_v37  ;;  %v84_v53 = vadd.f32 %v75_v38, %v62_v39 }
  0x22   :  { %v93_v54 = vmax.f32 %v77_v46, 0.0  ;;  %v94_v55 = vmax.f32 %v78_v47, 0.0  ;;  %v95_v56 = vmax.f32 %v79_v48, 0.0  ;;  %v96_v57 = vmax.f32 %v80_v49, 0.0 }
  0x23   :  { %v97_v60 = vmax.f32 %v81_v50, 0.0  ;;  %v98_v61 = vmax.f32 %v82_v51, 0.0  ;;  %v99_v62 = vmax.f32 %v83_v52, 0.0  ;;  %v100_v63 = vmax.f32 %v84_v53, 0.0 }
  0x24   :  { %109 = vst [vmem:[%s274_s5] sm:$0xff] %v93_v54  ;;  %110 = vst [vmem:[%s274_s5 + $0x8] sm:$0xff] %v94_v55  ;;  %v85_v0 = vadd.f32 %v75_v38, %v63_v40  ;;  %v86_v1 = vadd.f32 %v75_v38, %v64_v41  ;;  %v87_v2 = vadd.f32 %v75_v38, %v65_v42 }
  0x25   :  { %111 = vst [vmem:[%s274_s5 + $0x10] sm:$0xff] %v95_v56  ;;  %112 = vst [vmem:[%s274_s5 + $0x18] sm:$0xff] %v96_v57  ;;  %v88_v3 = vadd.f32 %v75_v38, %v66_v43  ;;  %v89_v4 = vadd.f32 %v75_v38, %v67_v44  ;;  %v90_v5 = vadd.f32 %v75_v38, %v68_v45 }
  0x26   :  { %113 = vst [vmem:[%s274_s5 + $0x20] sm:$0xff] %v97_v60  ;;  %114 = vst [vmem:[%s274_s5 + $0x28] sm:$0xff] %v98_v61  ;;  %v69_v6 = vmul.f32 %v53_v20, %v47_v58  ;;  %v70_v7 = vmul.f32 %v53_v20, %v48_v59  ;;  %v101_v8 = vmax.f32 %v85_v0, 0.0  ;;  %v102_v9 = vmax.f32 %v86_v1, 0.0 }
  0x27   :  { %115 = vst [vmem:[%s274_s5 + $0x30] sm:$0xff] %v99_v62  ;;  %116 = vst [vmem:[%s274_s5 + $0x38] sm:$0xff] %v100_v63  ;;  %v103_v10 = vmax.f32 %v87_v2, 0.0  ;;  %v104_v11 = vmax.f32 %v88_v3, 0.0  ;;  %v105_v12 = vmax.f32 %v89_v4, 0.0  ;;  %v106_v13 = vmax.f32 %v90_v5, 0.0 }
  0x28   :  { %v91_v14 = vadd.f32 %v75_v38, %v69_v6  ;;  %v92_v15 = vadd.f32 %v75_v38, %v70_v7  ;;  %117 = vst [vmem:[%s274_s5 + $0x40] sm:$0xff] %v101_v8  ;;  %118 = vst [vmem:[%s274_s5 + $0x48] sm:$0xff] %v102_v9 }
  0x29   :  { %119 = vst [vmem:[%s274_s5 + $0x50] sm:$0xff] %v103_v10  ;;  %120 = vst [vmem:[%s274_s5 + $0x58] sm:$0xff] %v104_v11 }
  0x2a   :  { %121 = vst [vmem:[%s274_s5 + $0x60] sm:$0xff] %v105_v12  ;;  %122 = vst [vmem:[%s274_s5 + $0x68] sm:$0xff] %v106_v13  ;;  %v107_v16 = vmax.f32 %v91_v14, 0.0  ;;  %v108_v17 = vmax.f32 %v92_v15, 0.0 }
  0x2c   :  { %123 = vst [vmem:[%s274_s5 + $0x70] sm:$0xff] %v107_v16  ;;  %124 = vst [vmem:[%s274_s5 + $0x78] sm:$0xff] %v108_v17 }

// kernel: residual_forward.4
= control target key start
LH: loop header
LB: loop body
LE: loop exit
PB: predicated region body
PF: predicated region fallthrough
CT: control target
= control target key end

     0   :  { %vm122_vm0 = vcmask 1041408   ;;  %vm97_vm1 = vcmask 293888   ;;  %v387_v12 = vmov 0.0   ;;  %s520_s1 = inlined_call_operand.vmem [shape: bf16[36,128], index: 1, kind: input, shape index: {}]   ;;  %s521_s0 = inlined_call_operand.vmem [shape: bf16[128,36], index: 0, kind: input, shape index: {}]   ;;  %s522_s3 = inlined_call_operand.vmem [shape: f32[1,128], index: 3, kind: output, shape index: {1}]   ;;  %s523_s4 = inlined_call_operand.vmem [shape: f32[1,128], index: 4, kind: output, shape index: {2}]   ;;  %s524_s2 = inlined_call_operand.vmem [shape: f32[128,128], index: 2, kind: output, shape index: {0}]  }
   0x1   :  { %v376_v0 = vld [vmem:[%s520_s1 + $0x10] ss:$0 sps:$4 sm:$0x33]   ;;  %v377_v1 = vld [vmem:[%s520_s1 + $0x8] sm:$0xff]   ;;  %v379_v3 = vld [vmem:[%s521_s0] sm:$0xff]   ;;  %19 = vst [vmem:[%s522_s3] sm:$0x1] %v387_v12 }
   0x2   :  { %373 = vmatprep.subr.msk.bf16.mxu0 %vm122_vm0, %v376_v0  ;;  %v124_v2 = vsel %vm122_vm0, %v376_v0, 0  ;;  %374 = vmatprep.subr.msk.bf16.mxu1 %vm122_vm0, %v376_v0  ;;  %v378_v4 = vld [vmem:[%s520_s1] sm:$0xff]   ;;  %v380_v6 = vld [vmem:[%s521_s0 + $0x8] sm:$0xff]   ;;  %v381_v8 = vld [vmem:[%s521_s0 + $0x10] sm:$0xff]   ;;  %20 = vst [vmem:[%s523_s4] sm:$0x1] %v387_v12 }
   0x3   :  { %346 = vmatpush3.bf16.msra.mxu0 %v124_v2  ;;  %370 = vmatpush3.bf16.msra.mxu1 %v124_v2  ;;  %v383_v5 = vld [vmem:[%s521_s0 + $0x20] sm:$0xff]   ;;  %v384_v7 = vld [vmem:[%s521_s0 + $0x28] sm:$0xff]   ;;  %v385_v9 = vld [vmem:[%s521_s0 + $0x30] sm:$0xff]  }
   0x4   :  { %347 = vmatprep.subr.bf16.mxu0 %v377_v1  ;;  %368 = vmatprep.subr.bf16.mxu1 %v377_v1  ;;  %v382_v10 = vld [vmem:[%s521_s0 + $0x18] sm:$0xff]  }
   0x5   :  { %351 = vmatprep.mubr.msk.bf16.mxu0 %vm97_vm1, %v379_v3  ;;  %359 = vmatprep.mubr.msk.bf16.mxu1 %vm97_vm1, %v383_v5  ;;  %v386_v11 = vld [vmem:[%s521_s0 + $0x38] sm:$0xff]  }
   0x7   :  { %348 = vmatpush3.bf16.msra.mxu0 %v377_v1  ;;  %371 = vmatpush3.bf16.msra.mxu1 %v377_v1 }
   0x8   :  { %349 = vmatprep.subr.bf16.mxu0 %v378_v4  ;;  %369 = vmatprep.subr.bf16.mxu1 %v378_v4 }
   0xb   :  { %350 = vmatpush3.bf16.msra.mxu0 %v378_v4  ;;  %372 = vmatpush3.bf16.msra.mxu1 %v378_v4 }
   0xe   :  { %352 = vmatmul.mubr.msk.bf16.vlgmr.msra.gmra.mxu0 %vm97_vm1, %v380_v6  ;;  %360 = vmatmul.mubr.msk.bf16.vlgmr.msra.gmra.mxu1 %vm97_vm1, %v384_v7 }
   0xf   :  { %355 = vmatprep.mubr.msk.bf16.mxu0 %vm97_vm1, %v381_v8  ;;  %363 = vmatprep.mubr.msk.bf16.mxu1 %vm97_vm1, %v385_v9 }
  0x16   :  { %356 = vmatmul.mubr.msk.bf16.gmra.mxu0 %vm97_vm1, %v382_v10  ;;  %364 = vmatmul.mubr.msk.bf16.gmra.mxu1 %vm97_vm1, %v386_v11 }
  0xce   :  { %v353_v13 = vpop.f32.mrf.mxu0  ;;  %v361_v14 = vpop.f32.mrf.mxu1 }
  0xcf   :  { %225 = vst [vmem:[%s524_s2 + $0x10] sm:$0xff] %v353_v13  ;;  %233 = vst [vmem:[%s524_s2 + $0x50] sm:$0xff] %v361_v14  ;;  %v266_v26 = vmul.f32 %v353_v13, %v353_v13  ;;  %v274_v56 = vmul.f32 %v361_v14, %v361_v14 }
  0xd0   :  { %v160_v15 = vpop.f32.mrf.mxu0  ;;  %v192_v16 = vpop.f32.mrf.mxu1 }
  0xd1   :  { %223 = vst [vmem:[%s524_s2] sm:$0xff] %v160_v15  ;;  %231 = vst [vmem:[%s524_s2 + $0x40] sm:$0xff] %v192_v16  ;;  %v264_v21 = vmul.f32 %v160_v15, %v160_v15  ;;  %v272_v50 = vmul.f32 %v192_v16, %v192_v16 }
  0xd2   :  { %v354_v17 = vpop.f32.mrf.mxu0  ;;  %v362_v18 = vpop.f32.mrf.mxu1 }
  0xd3   :  { %226 = vst [vmem:[%s524_s2 + $0x18] sm:$0xff] %v354_v17  ;;  %234 = vst [vmem:[%s524_s2 + $0x58] sm:$0xff] %v362_v18  ;;  %v267_v31 = vmul.f32 %v354_v17, %v354_v17  ;;  %v275_v59 = vmul.f32 %v362_v18, %v362_v18 }
  0xd4   :  { %v163_v19 = vpop.f32.mrf.mxu0  ;;  %v195_v20 = vpop.f32.mrf.mxu1 }
  0xd5   :  { %224 = vst [vmem:[%s524_s2 + $0x8] sm:$0xff] %v163_v19  ;;  %v240_v22 = vadd.f32 %v163_v19, %v160_v15  ;;  %v265_v23 = vmul.f32 %v163_v19, %v163_v19  ;;  %232 = vst [vmem:[%s524_s2 + $0x48] sm:$0xff] %v195_v20  ;;  %v273_v54 = vmul.f32 %v195_v20, %v195_v20 }
  0xd6   :  { %v357_v24 = vpop.f32.mrf.mxu0  ;;  %v365_v25 = vpop.f32.mrf.mxu1 }
  0xd7   :  { %v241_v27 = vadd.f32 %v353_v13, %v240_v22  ;;  %v280_v28 = vadd.f32 %v265_v23, %v264_v21  ;;  %229 = vst [vmem:[%s524_s2 + $0x30] sm:$0xff] %v357_v24  ;;  %237 = vst [vmem:[%s524_s2 + $0x70] sm:$0xff] %v365_v25  ;;  %v270_v44 = vmul.f32 %v357_v24, %v357_v24  ;;  %v263_v23 = vld [vmem:[%s523_s4] sm:$0x1] }
  0xd8   :  { %v176_v29 = vpop.f32.mrf.mxu0  ;;  %v208_v30 = vpop.f32.mrf.mxu1  ;;  %v278_v4 = vmul.f32 %v365_v25, %v365_v25 }
  0xd9   :  { %v281_v32 = vadd.f32 %v280_v28, %v266_v26  ;;  %227 = vst [vmem:[%s524_s2 + $0x20] sm:$0xff] %v176_v29  ;;  %v242_v33 = vadd.f32 %v354_v17, %v241_v27  ;;  %235 = vst [vmem:[%s524_s2 + $0x60] sm:$0xff] %v208_v30  ;;  %v268_v37 = vmul.f32 %v176_v29, %v176_v29 }
  0xda   :  { %v358_v34 = vpop.f32.mrf.mxu0  ;;  %v366_v35 = vpop.f32.mrf.mxu1  ;;  %v276_v63 = vmul.f32 %v208_v30, %v208_v30 }
  0xdb   :  { %v243_v36 = vadd.f32 %v242_v33, %v176_v29  ;;  %v282_v38 = vadd.f32 %v281_v32, %v267_v31  ;;  %230 = vst [vmem:[%s524_s2 + $0x38] sm:$0xff] %v358_v34  ;;  %238 = vst [vmem:[%s524_s2 + $0x78] sm:$0xff] %v366_v35  ;;  %v271_v47 = vmul.f32 %v358_v34, %v358_v34 }
  0xdc   :  { %v179_v39 = vpop.f32.mrf.mxu0  ;;  %v211_v40 = vpop.f32.mrf.mxu1  ;;  %v279_v7 = vmul.f32 %v366_v35, %v366_v35 }
  0xdd   :  { %v283_v41 = vadd.f32 %v282_v38, %v268_v37  ;;  %228 = vst [vmem:[%s524_s2 + $0x28] sm:$0xff] %v179_v39  ;;  %v244_v42 = vadd.f32 %v243_v36, %v179_v39  ;;  %v269_v43 = vmul.f32 %v179_v39, %v179_v39  ;;  %236 = vst [vmem:[%s524_s2 + $0x68] sm:$0xff] %v211_v40 }
  0xde   :  { %v277_v3 = vmul.f32 %v211_v40, %v211_v40 }
  0xdf   :  { %v245_v45 = vadd.f32 %v357_v24, %v244_v42  ;;  %v284_v46 = vadd.f32 %v283_v41, %v269_v43 }
  0xe1   :  { %v246_v48 = vadd.f32 %v358_v34, %v245_v45  ;;  %v285_v49 = vadd.f32 %v284_v46, %v270_v44 }
  0xe3   :  { %v286_v51 = vadd.f32 %v285_v49, %v271_v47  ;;  %v247_v52 = vadd.f32 %v246_v48, %v192_v16 }
  0xe5   :  { %v248_v53 = vadd.f32 %v247_v52, %v195_v20  ;;  %v287_v55 = vadd.f32 %v286_v51, %v272_v50  ;;  %v239_v20 = vld [vmem:[%s522_s3] sm:$0x1] }
  0xe7   :  { %v249_v57 = vadd.f32 %v361_v14, %v248_v53  ;;  %v288_v58 = vadd.f32 %v287_v55, %v273_v54 }
  0xe9   :  { %v289_v60 = vadd.f32 %v288_v58, %v274_v56  ;;  %v250_v61 = vadd.f32 %v362_v18, %v249_v57 }
  0xeb   :  { %v251_v62 = vadd.f32 %v250_v61, %v208_v30  ;;  %v290_v0 = vadd.f32 %v289_v60, %v275_v59 }
  0xed   :  { %v291_v1 = vadd.f32 %v290_v0, %v276_v63  ;;  %v252_v2 = vadd.f32 %v251_v62, %v211_v40 }
  0xef   :  { %v253_v5 = vadd.f32 %v365_v25, %v252_v2  ;;  %v292_v6 = vadd.f32 %v291_v1, %v277_v3 }
  0xf1   :  { %v254_v8 = vadd.f32 %v366_v35, %v253_v5  ;;  %v293_v9 = vadd.f32 %v292_v6, %v278_v4 }
  0xf3   :  { %v255_v10 = vrot.slane %v254_v8, 4  ;;  %v294_v11 = vadd.f32 %v293_v9, %v279_v7 }
  0xf5   :  { %v256_v12 = vadd.f32 %v255_v10, %v254_v8  ;;  %v295_v13 = vrot.slane %v294_v11, 4 }
  0xf7   :  { %v257_v14 = vrot.slane %v256_v12, 2  ;;  %v296_v15 = vadd.f32 %v295_v13, %v294_v11 }
  0xf9   :  { %v258_v16 = vadd.f32 %v257_v14, %v256_v12  ;;  %v297_v17 = vrot.slane %v296_v15, 2 }
  0xfb   :  { %v259_v18 = vrot.slane %v258_v16, 1  ;;  %v298_v19 = vadd.f32 %v297_v17, %v296_v15 }
  0xfd   :  { %v260_v21 = vadd.f32 %v259_v18, %v258_v16  ;;  %v299_v22 = vrot.slane %v298_v19, 1 }
  0xff   :  { %v261_v24 = vadd.f32 %v260_v21, %v239_v20  ;;  %v300_v25 = vadd.f32 %v299_v22, %v298_v19 }
 0x101   :  { %262 = vst [vmem:[%s522_s3] sm:$0x1] %v261_v24  ;;  %v301_v26 = vadd.f32 %v300_v25, %v263_v23 }
 0x103   :  { %302 = vst [vmem:[%s523_s4] sm:$0x1] %v301_v26 }

// kernel: residual_forward.6
= control target key start
LH: loop header
LB: loop body
LE: loop exit
PB: predicated region body
PF: predicated region fallthrough
CT: control target
= control target key end

     0   :  { %vm138_vm0 = vcmask 1043456   ;;  %vm113_vm1 = vcmask 588800   ;;  %v417_v14 = vmov 0.0   ;;  %s556_s1 = inlined_call_operand.vmem [shape: bf16[72,128], index: 1, kind: input, shape index: {}]   ;;  %s557_s0 = inlined_call_operand.vmem [shape: bf16[128,72], index: 0, kind: input, shape index: {}]   ;;  %s558_s3 = inlined_call_operand.vmem [shape: f32[1,128], index: 3, kind: output, shape index: {1}]   ;;  %s559_s4 = inlined_call_operand.vmem [shape: f32[1,128], index: 4, kind: output, shape index: {2}]   ;;  %s560_s2 = inlined_call_operand.vmem [shape: f32[128,128], index: 2, kind: output, shape index: {0}]  }
   0x1   :  { %v404_v0 = vld [vmem:[%s556_s1 + $0x20] ss:$0 sps:$4 sm:$0xff]   ;;  %v405_v1 = vld [vmem:[%s556_s1 + $0x18] sm:$0xff]   ;;  %v406_v3 = vld [vmem:[%s556_s1 + $0x10] sm:$0xff]   ;;  %19 = vst [vmem:[%s558_s3] sm:$0x1] %v417_v14 }
   0x2   :  { %401 = vmatprep.subr.msk.bf16.mxu0 %vm138_vm0, %v404_v0  ;;  %v140_v2 = vsel %vm138_vm0, %v404_v0, 0  ;;  %402 = vmatprep.subr.msk.bf16.mxu1 %vm138_vm0, %v404_v0  ;;  %v409_v4 = vld [vmem:[%s557_s0] sm:$0xff]   ;;  %v407_v5 = vld [vmem:[%s556_s1 + $0x8] sm:$0xff]   ;;  %v411_v10 = vld [vmem:[%s557_s0 + $0x10] sm:$0xff]   ;;  %20 = vst [vmem:[%s559_s4] sm:$0x1] %v417_v14 }
   0x3   :  { %366 = vmatpush3.bf16.msra.mxu0 %v140_v2  ;;  %396 = vmatpush3.bf16.msra.mxu1 %v140_v2  ;;  %v413_v6 = vld [vmem:[%s557_s0 + $0x20] sm:$0xff]   ;;  %v410_v8 = vld [vmem:[%s557_s0 + $0x8] sm:$0xff]   ;;  %v415_v11 = vld [vmem:[%s557_s0 + $0x30] sm:$0xff]  }
   0x4   :  { %367 = vmatprep.subr.bf16.mxu0 %v405_v1  ;;  %392 = vmatprep.subr.bf16.mxu1 %v405_v1  ;;  %v408_v7 = vld [vmem:[%s556_s1] sm:$0xff]   ;;  %v414_v9 = vld [vmem:[%s557_s0 + $0x28] sm:$0xff]   ;;  %v412_v12 = vld [vmem:[%s557_s0 + $0x18] sm:$0xff]  }
   0x5   :  { %375 = vmatprep.mubr.msk.bf16.mxu0 %vm113_vm1, %v409_v4  ;;  %383 = vmatprep.mubr.msk.bf16.mxu1 %vm113_vm1, %v413_v6  ;;  %v416_v13 = vld [vmem:[%s557_s0 + $0x38] sm:$0xff]  }
   0x7   :  { %368 = vmatpush3.bf16.msra.mxu0 %v405_v1  ;;  %397 = vmatpush3.bf16.msra.mxu1 %v405_v1 }
   0x8   :  { %369 = vmatprep.subr.bf16.mxu0 %v406_v3  ;;  %393 = vmatprep.subr.bf16.mxu1 %v406_v3 }
   0xb   :  { %370 = vmatpush3.bf16.msra.mxu0 %v406_v3  ;;  %398 = vmatpush3.bf16.msra.mxu1 %v406_v3 }
   0xc   :  { %371 = vmatprep.subr.bf16.mxu0 %v407_v5  ;;  %394 = vmatprep.subr.bf16.mxu1 %v407_v5 }
   0xf   :  { %372 = vmatpush3.bf16.msra.mxu0 %v407_v5  ;;  %399 = vmatpush3.bf16.msra.mxu1 %v407_v5 }
  0x10   :  { %373 = vmatprep.subr.bf16.mxu0 %v408_v7  ;;  %395 = vmatprep.subr.bf16.mxu1 %v408_v7 }
  0x13   :  { %374 = vmatpush3.bf16.msra.mxu0 %v408_v7  ;;  %400 = vmatpush3.bf16.msra.mxu1 %v408_v7 }
  0x16   :  { %376 = vmatmul.mubr.msk.bf16.vlgmr.msra.gmra.mxu0 %vm113_vm1, %v410_v8  ;;  %384 = vmatmul.mubr.msk.bf16.vlgmr.msra.gmra.mxu1 %vm113_vm1, %v414_v9 }
  0x17   :  { %379 = vmatprep.mubr.msk.bf16.mxu0 %vm113_vm1, %v411_v10  ;;  %387 = vmatprep.mubr.msk.bf16.mxu1 %vm113_vm1, %v415_v11 }
  0x1e   :  { %380 = vmatmul.mubr.msk.bf16.gmra.mxu0 %vm113_vm1, %v412_v12  ;;  %388 = vmatmul.mubr.msk.bf16.gmra.mxu1 %vm113_vm1, %v416_v13 }
  0xd6   :  { %v377_v15 = vpop.f32.mrf.mxu0  ;;  %v385_v16 = vpop.f32.mrf.mxu1 }
  0xd7   :  { %241 = vst [vmem:[%s560_s2 + $0x10] sm:$0xff] %v377_v15  ;;  %249 = vst [vmem:[%s560_s2 + $0x50] sm:$0xff] %v385_v16  ;;  %v282_v28 = vmul.f32 %v377_v15, %v377_v15  ;;  %v290_v58 = vmul.f32 %v385_v16, %v385_v16 }
  0xd8   :  { %v176_v17 = vpop.f32.mrf.mxu0  ;;  %v208_v18 = vpop.f32.mrf.mxu1 }
  0xd9   :  { %239 = vst [vmem:[%s560_s2] sm:$0xff] %v176_v17  ;;  %247 = vst [vmem:[%s560_s2 + $0x40] sm:$0xff] %v208_v18  ;;  %v280_v23 = vmul.f32 %v176_v17, %v176_v17  ;;  %v288_v52 = vmul.f32 %v208_v18, %v208_v18 }
  0xda   :  { %v378_v19 = vpop.f32.mrf.mxu0  ;;  %v386_v20 = vpop.f32.mrf.mxu1 }
  0xdb   :  { %242 = vst [vmem:[%s560_s2 + $0x18] sm:$0xff] %v378_v19  ;;  %250 = vst [vmem:[%s560_s2 + $0x58] sm:$0xff] %v386_v20  ;;  %v283_v33 = vmul.f32 %v378_v19, %v378_v19  ;;  %v291_v61 = vmul.f32 %v386_v20, %v386_v20 }
  0xdc   :  { %v179_v21 = vpop.f32.mrf.mxu0  ;;  %v211_v22 = vpop.f32.mrf.mxu1 }
  0xdd   :  { %240 = vst [vmem:[%s560_s2 + $0x8] sm:$0xff] %v179_v21  ;;  %v256_v24 = vadd.f32 %v179_v21, %v176_v17  ;;  %v281_v25 = vmul.f32 %v179_v21, %v179_v21  ;;  %248 = vst [vmem:[%s560_s2 + $0x48] sm:$0xff] %v211_v22  ;;  %v289_v56 = vmul.f32 %v211_v22, %v211_v22 }
  0xde   :  { %v381_v26 = vpop.f32.mrf.mxu0  ;;  %v389_v27 = vpop.f32.mrf.mxu1 }
  0xdf   :  { %v257_v29 = vadd.f32 %v377_v15, %v256_v24  ;;  %v296_v30 = vadd.f32 %v281_v25, %v280_v23  ;;  %245 = vst [vmem:[%s560_s2 + $0x30] sm:$0xff] %v381_v26  ;;  %253 = vst [vmem:[%s560_s2 + $0x70] sm:$0xff] %v389_v27  ;;  %v286_v46 = vmul.f32 %v381_v26, %v381_v26  ;;  %v279_v25 = vld [vmem:[%s559_s4] sm:$0x1] }
  0xe0   :  { %v192_v31 = vpop.f32.mrf.mxu0  ;;  %v224_v32 = vpop.f32.mrf.mxu1  ;;  %v294_v6 = vmul.f32 %v389_v27, %v389_v27 }
  0xe1   :  { %v297_v34 = vadd.f32 %v296_v30, %v282_v28  ;;  %243 = vst [vmem:[%s560_s2 + $0x20] sm:$0xff] %v192_v31  ;;  %v258_v35 = vadd.f32 %v378_v19, %v257_v29  ;;  %251 = vst [vmem:[%s560_s2 + $0x60] sm:$0xff] %v224_v32  ;;  %v284_v39 = vmul.f32 %v192_v31, %v192_v31 }
  0xe2   :  { %v382_v36 = vpop.f32.mrf.mxu0  ;;  %v390_v37 = vpop.f32.mrf.mxu1  ;;  %v292_v1 = vmul.f32 %v224_v32, %v224_v32 }
  0xe3   :  { %v259_v38 = vadd.f32 %v258_v35, %v192_v31  ;;  %v298_v40 = vadd.f32 %v297_v34, %v283_v33  ;;  %246 = vst [vmem:[%s560_s2 + $0x38] sm:$0xff] %v382_v36  ;;  %254 = vst [vmem:[%s560_s2 + $0x78] sm:$0xff] %v390_v37  ;;  %v287_v49 = vmul.f32 %v382_v36, %v382_v36 }
  0xe4   :  { %v195_v41 = vpop.f32.mrf.mxu0  ;;  %v227_v42 = vpop.f32.mrf.mxu1  ;;  %v295_v9 = vmul.f32 %v390_v37, %v390_v37 }
  0xe5   :  { %v299_v43 = vadd.f32 %v298_v40, %v284_v39  ;;  %244 = vst [vmem:[%s560_s2 + $0x28] sm:$0xff] %v195_v41  ;;  %v260_v44 = vadd.f32 %v259_v38, %v195_v41  ;;  %v285_v45 = vmul.f32 %v195_v41, %v195_v41  ;;  %252 = vst [vmem:[%s560_s2 + $0x68] sm:$0xff] %v227_v42 }
  0xe6   :  { %v293_v5 = vmul.f32 %v227_v42, %v227_v42 }
  0xe7   :  { %v261_v47 = vadd.f32 %v381_v26, %v260_v44  ;;  %v300_v48 = vadd.f32 %v299_v43, %v285_v45 }
  0xe9   :  { %v262_v50 = vadd.f32 %v382_v36, %v261_v47  ;;  %v301_v51 = vadd.f32 %v300_v48, %v286_v46 }
  0xeb   :  { %v302_v53 = vadd.f32 %v301_v51, %v287_v49  ;;  %v263_v54 = vadd.f32 %v262_v50, %v208_v18 }
  0xed   :  { %v264_v55 = vadd.f32 %v263_v54, %v211_v22  ;;  %v303_v57 = vadd.f32 %v302_v53, %v288_v52  ;;  %v255_v22 = vld [vmem:[%s558_s3] sm:$0x1] }
  0xef   :  { %v265_v59 = vadd.f32 %v385_v16, %v264_v55  ;;  %v304_v60 = vadd.f32 %v303_v57, %v289_v56 }
  0xf1   :  { %v305_v62 = vadd.f32 %v304_v60, %v290_v58  ;;  %v266_v63 = vadd.f32 %v386_v20, %v265_v59 }
  0xf3   :  { %v267_v0 = vadd.f32 %v266_v63, %v224_v32  ;;  %v306_v2 = vadd.f32 %v305_v62, %v291_v61 }
  0xf5   :  { %v307_v3 = vadd.f32 %v306_v2, %v292_v1  ;;  %v268_v4 = vadd.f32 %v267_v0, %v227_v42 }
  0xf7   :  { %v269_v7 = vadd.f32 %v389_v27, %v268_v4  ;;  %v308_v8 = vadd.f32 %v307_v3, %v293_v5 }
  0xf9   :  { %v270_v10 = vadd.f32 %v390_v37, %v269_v7  ;;  %v309_v11 = vadd.f32 %v308_v8, %v294_v6 }
  0xfb   :  { %v271_v12 = vrot.slane %v270_v10, 4  ;;  %v310_v13 = vadd.f32 %v309_v11, %v295_v9 }
  0xfd   :  { %v272_v14 = vadd.f32 %v271_v12, %v270_v10  ;;  %v311_v15 = vrot.slane %v310_v13, 4 }
  0xff   :  { %v273_v16 = vrot.slane %v272_v14, 2  ;;  %v312_v17 = vadd.f32 %v311_v15, %v310_v13 }
 0x101   :  { %v274_v18 = vadd.f32 %v273_v16, %v272_v14  ;;  %v313_v19 = vrot.slane %v312_v17, 2 }
 0x103   :  { %v275_v20 = vrot.slane %v274_v18, 1  ;;  %v314_v21 = vadd.f32 %v313_v19, %v312_v17 }
 0x105   :  { %v276_v23 = vadd.f32 %v275_v20, %v274_v18  ;;  %v315_v24 = vrot.slane %v314_v21, 1 }
 0x107   :  { %v277_v26 = vadd.f32 %v276_v23, %v255_v22  ;;  %v316_v27 = vadd.f32 %v315_v24, %v314_v21 }
 0x109   :  { %278 = vst [vmem:[%s558_s3] sm:$0x1] %v277_v26  ;;  %v317_v28 = vadd.f32 %v316_v27, %v279_v25 }
 0x10b   :  { %318 = vst [vmem:[%s559_s4] sm:$0x1] %v317_v28 }

// kernel: residual_forward.7
= control target key start
LH: loop header
LB: loop body
LE: loop exit
PB: predicated region body
PF: predicated region fallthrough
CT: control target
= control target key end

     0   :  { %vm132_vm0 = vcmask 1041408   ;;  %vm107_vm1 = vcmask 31744   ;;  %v250_v17 = vlaneseq  ;;  %s648_s6 = inlined_call_operand.vmem [shape: bf16[4,128], index: 6, kind: input, shape index: {}]   ;;  %s649_s5 = inlined_call_operand.vmem [shape: bf16[128,4], index: 5, kind: input, shape index: {}]   ;;  %s650_s1 = inlined_call_operand.vmem [shape: f32[1,128], index: 1, kind: input, shape index: {}]   ;;  %s651_s2 = inlined_call_operand.vmem [shape: f32[1,128], index: 2, kind: input, shape index: {}]   ;;  %s652_s3 = inlined_call_operand.vmem [shape: f32[1,128], index: 3, kind: input, shape index: {}]   ;;  %s653_s4 = inlined_call_operand.vmem [shape: f32[1,128], index: 4, kind: input, shape index: {}]   ;;  %s654_s0 = inlined_call_operand.vmem [shape: f32[128,128], index: 0, kind: input, shape index: {}]   ;;  %s655_s7 = inlined_call_operand.vmem [shape: f32[1,128], index: 7, kind: input, shape index: {}]   ;;  %s656_s8 = inlined_call_operand.vmem [shape: f32[128,128], index: 8, kind: output, shape index: {}]  }
   0x1   :  { %v59_v0 = vld [vmem:[%s648_s6] sm:$0x3]  ;;  %v395_v4 = vld [vmem:[%s649_s5 + $0x8] sm:$0xff]   ;;  %v397_v6 = vld [vmem:[%s649_s5 + $0x10] sm:$0xff]  }
   0x2   :  { %391 = vmatprep.subr.msk.bf16.mxu0 %vm132_vm0, %v59_v0  ;;  %392 = vmatprep.subr.msk.bf16.mxu1 %vm132_vm0, %v59_v0  ;;  %v134_v1 = vsel %vm132_vm0, %v59_v0, 0  ;;  %v393_v2 = vld [vmem:[%s649_s5] sm:$0xff]   ;;  %v396_v5 = vld [vmem:[%s649_s5 + $0x28] sm:$0xff]   ;;  %v398_v7 = vld [vmem:[%s649_s5 + $0x30] sm:$0xff]   ;;  %v251_v21 = vshrl.u32 %v250_v17, 7 }
   0x3   :  { %372 = vmatpush3.bf16.msra.mxu0 %v134_v1  ;;  %390 = vmatpush3.bf16.msra.mxu1 %v134_v1  ;;  %v394_v3 = vld [vmem:[%s649_s5 + $0x20] sm:$0xff]   ;;  %v399_v8 = vld [vmem:[%s649_s5 + $0x18] sm:$0xff]   ;;  %v235_v27 = vld [vmem:[%s654_s0 + $0x10] sm:$0xff] }
   0x4   :  { %373 = vmatprep.mubr.msk.bf16.mxu0 %vm107_vm1, %v393_v2  ;;  %381 = vmatprep.mubr.msk.bf16.mxu1 %vm107_vm1, %v394_v3  ;;  %v400_v9 = vld [vmem:[%s649_s5 + $0x38] sm:$0xff]   ;;  %v30_v10 = vld [vmem:[%s650_s1] sm:$0x1]  ;;  %v252_v23 = vsub.s32 0, %v251_v21  ;;  %v243_v28 = vld [vmem:[%s654_s0 + $0x50] sm:$0xff] }
   0x5   :  { %v34_v11 = vmul.f32 0.0078125, %v30_v10  ;;  %v31_v12 = vld [vmem:[%s651_s2] sm:$0x1]  ;;  %v236_v33 = vld [vmem:[%s654_s0 + $0x18] sm:$0xff]  ;;  %v234_v36 = vld [vmem:[%s654_s0 + $0x8] sm:$0xff] }
   0x6   :  { %374 = vmatmul.mubr.msk.bf16.vlgmr.msra.gmra.mxu0 %vm107_vm1, %v395_v4  ;;  %382 = vmatmul.mubr.msk.bf16.vlgmr.msra.gmra.mxu1 %vm107_vm1, %v396_v5  ;;  %v35_v13 = vmul.f32 0.0078125, %v31_v12  ;;  %v32_v19 = vld [vmem:[%s652_s3] sm:$0x1]  ;;  %v244_v34 = vld [vmem:[%s654_s0 + $0x58] sm:$0xff]  ;;  %v242_v37 = vld [vmem:[%s654_s0 + $0x48] sm:$0xff] }
   0x7   :  { %377 = vmatprep.mubr.msk.bf16.mxu0 %vm107_vm1, %v397_v6  ;;  %385 = vmatprep.mubr.msk.bf16.mxu1 %vm107_vm1, %v398_v7  ;;  %v36_v14 = vmul.f32 %v34_v11, %v34_v11  ;;  %v33_v24 = vld [vmem:[%s653_s4] sm:$0x1]  ;;  %v239_v40 = vld [vmem:[%s654_s0 + $0x30] sm:$0xff]  ;;  %v240_v10 = vld [vmem:[%s654_s0 + $0x38] sm:$0xff] }
   0x8   :  { %v233_v29 = vld [vmem:[%s654_s0] sm:$0xff]  ;;  %v247_v41 = vld [vmem:[%s654_s0 + $0x70] sm:$0xff] }
   0x9   :  { %v37_v15 = vsub.f32 %v35_v13, %v36_v14  ;;  %v241_v30 = vld [vmem:[%s654_s0 + $0x40] sm:$0xff] }
   0xa   :  { %v536_v42 = vld [vmem:[%s655_s7] ss:$0 sm:$0xff] }
   0xb   :  { %v38_v16 = vadd.f32 1e-05, %v37_v15  ;;  %v237_v45 = vld [vmem:[%s654_s0 + $0x20] sm:$0xff] }
   0xc   :  { %v245_v49 = vld [vmem:[%s654_s0 + $0x60] sm:$0xff] }
   0xd   :  { %401 = vrsqrt.f32 %v38_v16  ;;  %v248_v16 = vld [vmem:[%s654_s0 + $0x78] sm:$0xff] }
   0xe   :  { %378 = vmatmul.mubr.msk.bf16.gmra.mxu0 %vm107_vm1, %v399_v8  ;;  %386 = vmatmul.mubr.msk.bf16.gmra.mxu1 %vm107_vm1, %v400_v9 }
  0x1a   :  { %v402_v18 = vpop.eup %401 }
  0x1b   :  { %v40_v20 = vmul.f32 %v402_v18, %v32_v19 }
  0x1d   :  { %v41_v22 = vmul.f32 %v40_v20, %v34_v11  ;;  %v495_v26 = vrot.slane %v40_v20, %v252_v23 }
  0x1f   :  { %v42_v25 = vsub.f32 %v33_v24, %v41_v22  ;;  %v257_v31 = vmul.f32 %v495_v26, %v235_v27  ;;  %v265_v35 = vmul.f32 %v495_v26, %v243_v28  ;;  %v255_v38 = vmul.f32 %v495_v26, %v233_v29  ;;  %v238_v22 = vld [vmem:[%s654_s0 + $0x28] sm:$0xff] }
  0x20   :  { %v263_v39 = vmul.f32 %v495_v26, %v241_v30  ;;  %v258_v43 = vmul.f32 %v495_v26, %v236_v33  ;;  %v266_v44 = vmul.f32 %v495_v26, %v244_v34  ;;  %v256_v47 = vmul.f32 %v495_v26, %v234_v36  ;;  %v246_v29 = vld [vmem:[%s654_s0 + $0x68] sm:$0xff] }
  0x21   :  { %v510_v32 = vrot.slane %v42_v25, %v252_v23  ;;  %v264_v48 = vmul.f32 %v495_v26, %v242_v37  ;;  %v261_v52 = vmul.f32 %v495_v26, %v239_v40  ;;  %v269_v53 = vmul.f32 %v495_v26, %v247_v41 }
  0x22   :  { %v259_v58 = vmul.f32 %v495_v26, %v237_v45  ;;  %v267_v63 = vmul.f32 %v495_v26, %v245_v49  ;;  %v262_v28 = vmul.f32 %v495_v26, %v240_v10  ;;  %v260_v40 = vmul.f32 %v495_v26, %v238_v22 }
  0x23   :  { %v279_v46 = vadd.f32 %v510_v32, %v257_v31  ;;  %v287_v51 = vadd.f32 %v510_v32, %v265_v35  ;;  %v277_v56 = vadd.f32 %v510_v32, %v255_v38  ;;  %v285_v57 = vadd.f32 %v510_v32, %v263_v39 }
  0x24   :  { %v280_v61 = vadd.f32 %v510_v32, %v258_v43  ;;  %v288_v62 = vadd.f32 %v510_v32, %v266_v44  ;;  %v278_v3 = vadd.f32 %v510_v32, %v256_v47  ;;  %v286_v4 = vadd.f32 %v510_v32, %v264_v48 }
  0x25   :  { %v283_v8 = vadd.f32 %v510_v32, %v261_v52  ;;  %v291_v9 = vadd.f32 %v510_v32, %v269_v53  ;;  %v281_v15 = vadd.f32 %v510_v32, %v259_v58  ;;  %v289_v21 = vadd.f32 %v510_v32, %v267_v63 }
  0x26   :  { %v270_v35 = vmul.f32 %v495_v26, %v248_v16 }
  0xc6   :  { %v375_v50 = vpop.f32.mrf.mxu0  ;;  %v383_v55 = vpop.f32.mrf.mxu1 }
  0xc7   :  { %v179_v54 = vadd.f32 %v375_v50, %v536_v42  ;;  %v211_v59 = vadd.f32 %v383_v55, %v536_v42  ;;  %v292_v55 = vadd.f32 %v510_v32, %v270_v35 }
  0xc8   :  { %v170_v60 = vpop.f32.mrf.mxu0  ;;  %v202_v2 = vpop.f32.mrf.mxu1 }
  0xc9   :  { %v295_v0 = vadd.f32 %v279_v46, %v179_v54  ;;  %v171_v1 = vadd.f32 %v536_v42, %v170_v60  ;;  %v303_v5 = vadd.f32 %v287_v51, %v211_v59  ;;  %v203_v6 = vadd.f32 %v536_v42, %v202_v2 }
  0xca   :  { %v376_v7 = vpop.f32.mrf.mxu0  ;;  %v384_v14 = vpop.f32.mrf.mxu1  ;;  %v268_v46 = vmul.f32 %v495_v26, %v246_v29  ;;  %v284_v51 = vadd.f32 %v510_v32, %v262_v28  ;;  %v282_v60 = vadd.f32 %v510_v32, %v260_v40 }
  0xcb   :  { %v311_v11 = vmax.f32 %v295_v0, 0.0  ;;  %v293_v12 = vadd.f32 %v277_v56, %v171_v1  ;;  %v182_v13 = vadd.f32 %v376_v7, %v536_v42  ;;  %v319_v17 = vmax.f32 %v303_v5, 0.0 }
  0xcc   :  { %v301_v18 = vadd.f32 %v285_v57, %v203_v6  ;;  %v214_v19 = vadd.f32 %v384_v14, %v536_v42  ;;  %v173_v20 = vpop.f32.mrf.mxu0  ;;  %v205_v27 = vpop.f32.mrf.mxu1  ;;  %v290_v1 = vadd.f32 %v510_v32, %v268_v46 }
  0xcd   :  { %327 = vst [vmem:[%s656_s8 + $0x10] sm:$0xff] %v311_v11  ;;  %v309_v23 = vmax.f32 %v293_v12, 0.0  ;;  %v296_v24 = vadd.f32 %v280_v61, %v182_v13  ;;  %v174_v25 = vadd.f32 %v536_v42, %v173_v20  ;;  %335 = vst [vmem:[%s656_s8 + $0x50] sm:$0xff] %v319_v17  ;;  %v206_v33 = vadd.f32 %v536_v42, %v205_v27 }
  0xce   :  { %v317_v30 = vmax.f32 %v301_v18, 0.0  ;;  %v304_v31 = vadd.f32 %v288_v62, %v214_v19  ;;  %v379_v34 = vpop.f32.mrf.mxu0  ;;  %v387_v39 = vpop.f32.mrf.mxu1 }
  0xcf   :  { %325 = vst [vmem:[%s656_s8] sm:$0xff] %v309_v23  ;;  %v312_v36 = vmax.f32 %v296_v24, 0.0  ;;  %v294_v37 = vadd.f32 %v278_v3, %v174_v25  ;;  %v195_v38 = vadd.f32 %v379_v34, %v536_v42  ;;  %v302_v43 = vadd.f32 %v286_v4, %v206_v33 }
  0xd0   :  { %333 = vst [vmem:[%s656_s8 + $0x40] sm:$0xff] %v317_v30  ;;  %v320_v41 = vmax.f32 %v304_v31, 0.0  ;;  %v227_v44 = vadd.f32 %v387_v39, %v536_v42  ;;  %v186_v45 = vpop.f32.mrf.mxu0  ;;  %v218_v50 = vpop.f32.mrf.mxu1 }
  0xd1   :  { %328 = vst [vmem:[%s656_s8 + $0x18] sm:$0xff] %v312_v36  ;;  %v310_v47 = vmax.f32 %v294_v37, 0.0  ;;  %v299_v48 = vadd.f32 %v283_v8, %v195_v38  ;;  %v187_v49 = vadd.f32 %v536_v42, %v186_v45  ;;  %v318_v52 = vmax.f32 %v302_v43, 0.0 }
  0xd2   :  { %336 = vst [vmem:[%s656_s8 + $0x58] sm:$0xff] %v320_v41  ;;  %v307_v53 = vadd.f32 %v291_v9, %v227_v44  ;;  %v219_v54 = vadd.f32 %v536_v42, %v218_v50  ;;  %v380_v26 = vpop.f32.mrf.mxu0  ;;  %v388_v59 = vpop.f32.mrf.mxu1 }
  0xd3   :  { %326 = vst [vmem:[%s656_s8 + $0x8] sm:$0xff] %v310_v47  ;;  %v315_v56 = vmax.f32 %v299_v48, 0.0  ;;  %v297_v57 = vadd.f32 %v281_v15, %v187_v49  ;;  %v198_v58 = vadd.f32 %v380_v26, %v536_v42  ;;  %334 = vst [vmem:[%s656_s8 + $0x48] sm:$0xff] %v318_v52  ;;  %v230_v63 = vadd.f32 %v388_v59, %v536_v42 }
  0xd4   :  { %v323_v61 = vmax.f32 %v307_v53, 0.0  ;;  %v305_v62 = vadd.f32 %v289_v21, %v219_v54  ;;  %v189_v0 = vpop.f32.mrf.mxu0  ;;  %v221_v5 = vpop.f32.mrf.mxu1 }
  0xd5   :  { %331 = vst [vmem:[%s656_s8 + $0x30] sm:$0xff] %v315_v56  ;;  %v313_v2 = vmax.f32 %v297_v57, 0.0  ;;  %v300_v3 = vadd.f32 %v284_v51, %v198_v58  ;;  %v190_v4 = vadd.f32 %v536_v42, %v189_v0  ;;  %v308_v7 = vadd.f32 %v292_v55, %v230_v63 }
  0xd6   :  { %339 = vst [vmem:[%s656_s8 + $0x70] sm:$0xff] %v323_v61  ;;  %v321_v6 = vmax.f32 %v305_v62, 0.0  ;;  %v222_v8 = vadd.f32 %v536_v42, %v221_v5 }
  0xd7   :  { %329 = vst [vmem:[%s656_s8 + $0x20] sm:$0xff] %v313_v2  ;;  %v316_v32 = vmax.f32 %v300_v3, 0.0  ;;  %v298_v9 = vadd.f32 %v282_v60, %v190_v4  ;;  %v324_v10 = vmax.f32 %v308_v7, 0.0 }
  0xd8   :  { %337 = vst [vmem:[%s656_s8 + $0x60] sm:$0xff] %v321_v6  ;;  %v306_v11 = vadd.f32 %v290_v1, %v222_v8 }
  0xd9   :  { %332 = vst [vmem:[%s656_s8 + $0x38] sm:$0xff] %v316_v32  ;;  %v314_v12 = vmax.f32 %v298_v9, 0.0  ;;  %340 = vst [vmem:[%s656_s8 + $0x78] sm:$0xff] %v324_v10 }
  0xda   :  { %v322_v42 = vmax.f32 %v306_v11, 0.0 }
  0xdb   :  { %330 = vst [vmem:[%s656_s8 + $0x28] sm:$0xff] %v314_v12 }
  0xdc   :  { %338 = vst [vmem:[%s656_s8 + $0x68] sm:$0xff] %v322_v42 }

</bundles_post_ra>
